<compile_context>
chip_gen: v6e
topology: v6e:2x2x1
jax: 0.10.0
libtpu: 0.0.40
codegen_flags: <defaults>
</compile_context>

<pallas_src>
import functools

import jax
import jax.numpy as jnp
from jax import lax
from jax.experimental import pallas as pl
from jax.experimental.pallas import tpu as pltpu


# ---------------------------------------------------------------------------
# Fused kernel: mask gen + embedding gather + masked mean pool + pooler(tanh)
#               + classifier Linear (lane-padded classes)
# ---------------------------------------------------------------------------
def _bert_classifier_kernel(vl_ref,                      # [B] int32 (SMEM, prefetch)
                            tok_ref, seg_ref,            # [1, TS, 1] int32
                            tok_emb_ref, seg_emb_ref,    # [V, H] bf16, [2, H] bf16
                            pos_emb_ref,                 # [TS, H] bf16
                            wp_ref, bp_ref,              # [H, H] bf16, [1, H] f32
                            wc_ref, bc_ref,              # [H, CP] bf16, [1, CP] f32
                            out_ref,                     # [1, 1, CP] f32
                            acc_ref,                     # [1, H] f32 scratch
                            *, seq_len):
    TS = tok_ref.shape[1]
    V, H = tok_emb_ref.shape
    b = pl.program_id(0)            # TB == 1: one batch row per program
    s = pl.program_id(1)

    @pl.when(s == 0)
    def _init():
        acc_ref[...] = jnp.zeros_like(acc_ref)

    vl = vl_ref[b]                                            # scalar int32 (SMEM)

    # ---- attention-mask column for this sequence tile ----
    pos = s * TS + lax.broadcasted_iota(jnp.int32, (TS, 1), 0)
    mask = (pos < vl).astype(jnp.float32)                     # [TS, 1]

    # ---- fused token-embedding gather: one-hot @ table on the MXU ----
    ids = tok_ref[0, :, :]                                    # [TS, 1] int32
    onehot = (ids == lax.broadcasted_iota(jnp.int32, (TS, V), 1))
    onehot = onehot.astype(jnp.float32).astype(tok_emb_ref.dtype)   # exact 0/1 bf16
    tok_e = jnp.dot(onehot, tok_emb_ref[...],
                    preferred_element_type=jnp.float32)       # [TS, H] f32

    # ---- segment embedding: 2-row table -> exact linear blend (VPU) ----
    segf = seg_ref[0, :, :].astype(jnp.float32)               # [TS, 1] in {0, 1}
    seg0 = seg_emb_ref[0:1, :].astype(jnp.float32)            # [1, H]
    seg1 = seg_emb_ref[1:2, :].astype(jnp.float32)            # [1, H]
    seg_e = seg0 * (1.0 - segf) + seg1 * segf                 # [TS, H]

    h = tok_e + seg_e + pos_emb_ref[...].astype(jnp.float32)  # [TS, H] f32

    # ---- masked sum over the tile: VPU multiply + XLU reduce (MXU stays free) ----
    acc_ref[...] += jnp.sum(h * mask, axis=0, keepdims=True)  # [1, H]

    # ---- pooler + classifier once the whole sequence has been reduced ----
    @pl.when(s == pl.num_programs(1) - 1)
    def _finalize():
        denom = jnp.clip(vl.astype(jnp.float32), 1.0, float(seq_len))
        pooled = acc_ref[...] / denom                         # exact; once per row

        # synthetic BERT pooler: tanh(dense(pooled))
        pooler = jnp.tanh(
            jnp.dot(pooled.astype(wp_ref.dtype), wp_ref[...],
                    preferred_element_type=jnp.float32) + bp_ref[...])

        # dropout(dr_rate): module runs in eval mode -> identity
        # TODO(synk): training-mode dropout would need pltpu.prng_* masking.

        # classifier = nn.Linear(hidden_size, num_classes), lane-padded to CP
        out_ref[0] = (jnp.dot(pooler.astype(wc_ref.dtype), wc_ref[...],
                              preferred_element_type=jnp.float32) + bc_ref[...])


# ---------------------------------------------------------------------------
# Parameter prep (one-time: bf16 casts + lane-padding of the classifier)
# ---------------------------------------------------------------------------
def prepare_params(params):
    H = params["W_pool"].shape[0]
    C = params["W_cls"].shape[1]
    CP = 128 * pl.cdiv(C, 128)
    w_cls = jnp.zeros((H, CP), jnp.bfloat16).at[:, :C].set(
        params["W_cls"].astype(jnp.bfloat16))
    b_cls = jnp.zeros((1, CP), jnp.float32).at[:, :C].set(params["b_cls"])
    return {
        "tok_emb": params["tok_emb"].astype(jnp.bfloat16),
        "seg_emb": params["seg_emb"].astype(jnp.bfloat16),
        "pos_emb": params["pos_emb"].astype(jnp.bfloat16),
        "W_pool": params["W_pool"].astype(jnp.bfloat16),
        "b_pool": params["b_pool"].reshape(1, H).astype(jnp.float32),
        "W_cls_p": w_cls,
        "b_cls_p": b_cls,
        "num_classes": C,
    }


# ---------------------------------------------------------------------------
# Wrapper
# ---------------------------------------------------------------------------
def bert_classifier_forward(prep, token_ids, valid_length, segment_ids,
                            *, tile_s=None):
    B, S = token_ids.shape
    V, H = prep["tok_emb"].shape
    CP = prep["W_cls_p"].shape[1]
    C = prep["num_classes"]

    # Tiling:
    #   TB = 1 -> batch ("parallel") axis has B programs; shards across v7x's
    #             two TensorCores (no effect on v5e/v6e single-TC chips).
    #   TS    -> biggest sequence tile (multiple of 16 for bf16 sublanes) that
    #            fits the scoped VMEM budget together with the resident tables
    #            and weights (each ~2x for default double buffering):
    #              v6e: 128 MiB VMEM -> push TS toward full S.
    #              v7x:  64 MiB VMEM -> roughly halve TS vs the v6e config.
    #              v5e: default scoped limit is only 16 MiB -> raise
    #                   vmem_limit_bytes (done below) when growing TS.
    # TODO(synk): mark the grid-invariant weight specs pipeline_mode=
    #             pl.Buffered(1) when H is large to reclaim their 2nd buffer.
    TB = 1
    TS = S if tile_s is None else min(tile_s, S)
    assert S % TS == 0
    grid = (B // TB, S // TS)

    # seq dim on sublanes -> kernel sees ids / segments as (TS, 1) columns
    tok3 = token_ids.reshape(B, S, 1).astype(jnp.int32)
    seg3 = segment_ids.reshape(B, S, 1).astype(jnp.int32)

    kernel = functools.partial(_bert_classifier_kernel, seq_len=S)

    cost = pl.CostEstimate(
        flops=2 * B * (S * V * H + H * H + H * CP),
        transcendentals=B * H,
        bytes_accessed=(tok3.size + seg3.size + valid_length.size) * 4
        + (V * H + 2 * H + S * H + H * H + H * CP) * 2
        + (H + CP) * 4 + B * CP * 4,
    )

    out = pl.pallas_call(
        kernel,
        out_shape=jax.ShapeDtypeStruct((B, 1, CP), jnp.float32),
        grid_spec=pltpu.PrefetchScalarGridSpec(
            num_scalar_prefetch=1,                 # valid_length -> SMEM
            grid=grid,
            in_specs=[
                pl.BlockSpec((TB, TS, 1), lambda b, s, vl: (b, s, 0)),  # token ids
                pl.BlockSpec((TB, TS, 1), lambda b, s, vl: (b, s, 0)),  # segment ids
                # grid-invariant tables / weights stay resident in VMEM
                pl.BlockSpec((V, H), lambda b, s, vl: (0, 0)),          # tok_emb
                pl.BlockSpec((2, H), lambda b, s, vl: (0, 0)),          # seg_emb
                pl.BlockSpec((TS, H), lambda b, s, vl: (s, 0)),         # pos_emb
                pl.BlockSpec((H, H), lambda b, s, vl: (0, 0)),          # W_pool
                pl.BlockSpec((1, H), lambda b, s, vl: (0, 0)),          # b_pool
                pl.BlockSpec((H, CP), lambda b, s, vl: (0, 0)),         # W_cls (pad)
                pl.BlockSpec((1, CP), lambda b, s, vl: (0, 0)),         # b_cls (pad)
            ],
            out_specs=pl.BlockSpec((TB, 1, CP), lambda b, s, vl: (b, 0, 0)),
            scratch_shapes=[pltpu.VMEM((TB, H), jnp.float32)],
        ),
        compiler_params=pltpu.CompilerParams(
            dimension_semantics=("parallel", "arbitrary"),
            vmem_limit_bytes=32 * 1024 * 1024),
        cost_estimate=cost,
    )(valid_length.astype(jnp.int32), tok3, seg3,
      prep["tok_emb"], prep["seg_emb"], prep["pos_emb"],
      prep["W_pool"], prep["b_pool"], prep["W_cls_p"], prep["b_cls_p"])

    return out.reshape(B, CP)[:, :C]


def init_params(key, vocab=100, max_seq=32, hidden=32, num_classes=6):
    ks = jax.random.split(key, 5)
    return {
        "tok_emb": 0.1 * jax.random.normal(ks[0], (vocab, hidden), jnp.float32),
        "seg_emb": 0.1 * jax.random.normal(ks[1], (2, hidden), jnp.float32),
        "pos_emb": 0.1 * jax.random.normal(ks[2], (max_seq, hidden), jnp.float32),
        "W_pool": 0.2 * jax.random.normal(ks[3], (hidden, hidden), jnp.float32),
        "b_pool": jnp.zeros((hidden,), jnp.float32),
        "W_cls": 0.2 * jax.random.normal(ks[4], (hidden, num_classes), jnp.float32),
        "b_cls": jnp.zeros((num_classes,), jnp.float32),
    }


if __name__ == "__main__":
    B, S, H, C, V = 2, 32, 32, 6, 100

    key = jax.random.PRNGKey(0)
    k_par, k_tok, k_seg = jax.random.split(key, 3)

    params = init_params(k_par, vocab=V, max_seq=S, hidden=H, num_classes=C)
    prep = prepare_params(params)                     # one-time pad/cast

    token_ids = jax.random.randint(k_tok, (B, S), 0, V, dtype=jnp.int32)
    segment_ids = (jax.random.uniform(k_seg, (B, S)) < 0.3).astype(jnp.int32)
    valid_length = jnp.array([5, 27], dtype=jnp.int32)

    # full-seq tile (single seq step) and a 2-step tiled run (exercises the
    # cross-step accumulator) should both match the f32 reference.
    logits_full = jax.block_until_ready(
        bert_classifier_forward(prep, token_ids, valid_length, segment_ids))
    logits_tiled = jax.block_until_ready(
        bert_classifier_forward(prep, token_ids, valid_length, segment_ids,
                                tile_s=16))

    # pure-JAX f32 reference (same synthetic backbone)
    mask = (jnp.arange(S)[None, :] < valid_length[:, None]).astype(jnp.float32)
    h_f32 = (params["tok_emb"][token_ids] + params["seg_emb"][segment_ids]
             + params["pos_emb"][None, :S, :])
    denom = jnp.clip(valid_length.astype(jnp.float32), 1.0, float(S))[:, None]
    pooled = jnp.sum(h_f32 * mask[:, :, None], axis=1) / denom
    pooler = jnp.tanh(pooled @ params["W_pool"] + params["b_pool"])
    ref = pooler @ params["W_cls"] + params["b_cls"]

    assert logits_full.shape == (B, C) and logits_full.dtype == jnp.float32
    assert jnp.allclose(logits_full, ref, rtol=5e-2, atol=1e-3)
    assert jnp.allclose(logits_tiled, ref, rtol=5e-2, atol=1e-3)
    print("KERNEL_OK")
</pallas_src>

<mosaic_0001>
module attributes {stable_mosaic.version = 11 : i64} {
  func.func @_bert_classifier_kernel(%arg0: i32, %arg1: i32, %arg2: memref<2xi32, #tpu.memory_space<smem>>, %arg3: memref<1x32x1xi32, #tpu.memory_space<vmem>>, %arg4: memref<1x32x1xi32, #tpu.memory_space<vmem>>, %arg5: memref<100x32xbf16, #tpu.memory_space<vmem>>, %arg6: memref<2x32xbf16, #tpu.memory_space<vmem>>, %arg7: memref<32x32xbf16, #tpu.memory_space<vmem>>, %arg8: memref<32x32xbf16, #tpu.memory_space<vmem>>, %arg9: memref<1x32xf32, #tpu.memory_space<vmem>>, %arg10: memref<32x128xbf16, #tpu.memory_space<vmem>>, %arg11: memref<1x128xf32, #tpu.memory_space<vmem>>, %arg12: memref<1x1x128xf32, #tpu.memory_space<vmem>>, %arg13: memref<1x32xf32, #tpu.memory_space<vmem>>) attributes {dimension_semantics = [#tpu.dimension_semantics<parallel>, #tpu.dimension_semantics<arbitrary>], iteration_bounds = array<i64: 2, 1>, scalar_prefetch = 1 : i64, scratch_operands = 1 : i64, tpu.core_type = #tpu.core_type<tc>, window_params = [{transform_indices = @transform_0, window_bounds = array<i64: 1, 32, 1>}, {transform_indices = @transform_1, window_bounds = array<i64: 1, 32, 1>}, {pipeline_mode = #tpu.pipeline_mode<synchronous>, transform_indices = @transform_2, window_bounds = array<i64: 100, 32>}, {pipeline_mode = #tpu.pipeline_mode<synchronous>, transform_indices = @transform_3, window_bounds = array<i64: 2, 32>}, {transform_indices = @transform_4, window_bounds = array<i64: 32, 32>}, {pipeline_mode = #tpu.pipeline_mode<synchronous>, transform_indices = @transform_5, window_bounds = array<i64: 32, 32>}, {pipeline_mode = #tpu.pipeline_mode<synchronous>, transform_indices = @transform_6, window_bounds = array<i64: 1, 32>}, {pipeline_mode = #tpu.pipeline_mode<synchronous>, transform_indices = @transform_7, window_bounds = array<i64: 32, 128>}, {pipeline_mode = #tpu.pipeline_mode<synchronous>, transform_indices = @transform_8, window_bounds = array<i64: 1, 128>}, {transform_indices = @transform_9, window_bounds = array<i64: 1, 1, 128>}]} {
    %c0_i32 = arith.constant 0 : i32
    %0 = arith.cmpi eq, %arg1, %c0_i32 : i32
    %1 = arith.extui %0 : i1 to i32
    %c0_i32_0 = arith.constant 0 : i32
    %2 = arith.cmpi ne, %1, %c0_i32_0 : i32
    scf.if %2 {
      %cst_21 = arith.constant 0.000000e+00 : f32
      %53 = vector.broadcast %cst_21 : f32 to vector<1x32xf32>
      %c0_22 = arith.constant 0 : index
      %c0_23 = arith.constant 0 : index
      %54 = vector.load %arg13[%c0_22, %c0_23] : memref<1x32xf32, #tpu.memory_space<vmem>>, vector<1x32xf32>
      tpu.vector_store %arg13[%c0_22, %c0_23], %53 {strides = array<i32>} : memref<1x32xf32, #tpu.memory_space<vmem>>, vector<1x32xf32>,
    } else {
    }
    %3 = arith.index_cast %arg0 : i32 to index
    %4 = memref.load %arg2[%3] : memref<2xi32, #tpu.memory_space<smem>>
    %c32_i32 = arith.constant 32 : i32
    %5 = arith.muli %arg1, %c32_i32 : i32
    %6 = tpu.iota {dimensions = array<i32: 0>} : vector<32x1xi32>
    %7 = vector.broadcast %5 : i32 to vector<32x1xi32>
    %8 = arith.addi %7, %6 : vector<32x1xi32>
    %9 = vector.broadcast %4 : i32 to vector<32x1xi32>
    %10 = arith.cmpi slt, %8, %9 : vector<32x1xi32>
    %11 = arith.extui %10 : vector<32x1xi1> to vector<32x1xi32>
    %12 = arith.sitofp %11 : vector<32x1xi32> to vector<32x1xf32>
    %c0 = arith.constant 0 : index
    %c0_1 = arith.constant 0 : index
    %c0_2 = arith.constant 0 : index
    %13 = vector.load %arg3[%c0, %c0_1, %c0_2] : memref<1x32x1xi32, #tpu.memory_space<vmem>>, vector<1x32x1xi32>
    %14 = vector.shape_cast %13 : vector<1x32x1xi32> to vector<32x1xi32>
    %15 = tpu.iota {dimensions = array<i32: 1>} : vector<32x100xi32>
    %16 = vector.broadcast %14 : vector<32x1xi32> to vector<32x100xi32>
    %17 = arith.cmpi eq, %16, %15 : vector<32x100xi32>
    %18 = arith.extui %17 : vector<32x100xi1> to vector<32x100xi32>
    %19 = arith.sitofp %18 : vector<32x100xi32> to vector<32x100xf32>
    %20 = arith.truncf %19 : vector<32x100xf32> to vector<32x100xbf16>
    %c0_3 = arith.constant 0 : index
    %c0_4 = arith.constant 0 : index
    %21 = vector.load %arg5[%c0_3, %c0_4] : memref<100x32xbf16, #tpu.memory_space<vmem>>, vector<100x32xbf16>
    %cst = arith.constant dense<0.000000e+00> : vector<32x32xf32>
    %22 = tpu.matmul %20, %21, %cst {dimension_numbers = #tpu.dot_dimension_numbers<[1], [0], [0], [1], [0, 0, 1, 1], [], []>} : vector<32x100xbf16>, vector<100x32xbf16>, vector<32x32xf32> -> vector<32x32xf32>
    %c0_5 = arith.constant 0 : index
    %c0_6 = arith.constant 0 : index
    %c0_7 = arith.constant 0 : index
    %23 = vector.load %arg4[%c0_5, %c0_6, %c0_7] : memref<1x32x1xi32, #tpu.memory_space<vmem>>, vector<1x32x1xi32>
    %24 = vector.shape_cast %23 : vector<1x32x1xi32> to vector<32x1xi32>
    %25 = arith.sitofp %24 : vector<32x1xi32> to vector<32x1xf32>
    %c0_8 = arith.constant 0 : index
    %c0_9 = arith.constant 0 : index
    %26 = vector.load %arg6[%c0_8, %c0_9] : memref<2x32xbf16, #tpu.memory_space<vmem>>, vector<1x32xbf16>
    %27 = arith.extf %26 : vector<1x32xbf16> to vector<1x32xf32>
    %c1 = arith.constant 1 : index
    %c0_10 = arith.constant 0 : index
    %28 = vector.load %arg6[%c1, %c0_10] : memref<2x32xbf16, #tpu.memory_space<vmem>>, vector<1x32xbf16>
    %29 = arith.extf %28 : vector<1x32xbf16> to vector<1x32xf32>
    %cst_11 = arith.constant 1.000000e+00 : f32
    %30 = vector.broadcast %cst_11 : f32 to vector<32x1xf32>
    %31 = arith.subf %30, %25 : vector<32x1xf32>
    %32 = vector.broadcast %27 : vector<1x32xf32> to vector<32x32xf32>
    %33 = vector.broadcast %31 : vector<32x1xf32> to vector<32x32xf32>
    %34 = arith.mulf %32, %33 : vector<32x32xf32>
    %35 = vector.broadcast %29 : vector<1x32xf32> to vector<32x32xf32>
    %36 = vector.broadcast %25 : vector<32x1xf32> to vector<32x32xf32>
    %37 = arith.mulf %35, %36 : vector<32x32xf32>
    %38 = arith.addf %34, %37 : vector<32x32xf32>
    %39 = arith.addf %22, %38 : vector<32x32xf32>
    %c0_12 = arith.constant 0 : index
    %c0_13 = arith.constant 0 : index
    %40 = vector.load %arg7[%c0_12, %c0_13] : memref<32x32xbf16, #tpu.memory_space<vmem>>, vector<32x32xbf16>
    %41 = arith.extf %40 : vector<32x32xbf16> to vector<32x32xf32>
    %42 = arith.addf %39, %41 : vector<32x32xf32>
    %c0_14 = arith.constant 0 : index
    %c0_15 = arith.constant 0 : index
    %43 = vector.load %arg13[%c0_14, %c0_15] : memref<1x32xf32, #tpu.memory_space<vmem>>, vector<1x32xf32>
    %44 = vector.broadcast %12 : vector<32x1xf32> to vector<32x32xf32>
    %45 = arith.mulf %42, %44 : vector<32x32xf32>
    %cst_16 = arith.constant dense<0.000000e+00> : vector<32xf32>
    %46 = vector.multi_reduction <add>, %45, %cst_16 [0] : vector<32x32xf32> to vector<32xf32>
    %47 = vector.shape_cast %46 : vector<32xf32> to vector<1x32xf32>
    %48 = arith.addf %43, %47 : vector<1x32xf32>
    %c0_17 = arith.constant 0 : index
    %c0_18 = arith.constant 0 : index
    %49 = vector.load %arg13[%c0_17, %c0_18] : memref<1x32xf32, #tpu.memory_space<vmem>>, vector<1x32xf32>
    tpu.vector_store %arg13[%c0_17, %c0_18], %48 {strides = array<i32>} : memref<1x32xf32, #tpu.memory_space<vmem>>, vector<1x32xf32>,
    %c0_i32_19 = arith.constant 0 : i32
    %50 = arith.cmpi eq, %arg1, %c0_i32_19 : i32
    %51 = arith.extui %50 : i1 to i32
    %c0_i32_20 = arith.constant 0 : i32
    %52 = arith.cmpi ne, %51, %c0_i32_20 : i32
    scf.if %52 {
      %53 = arith.sitofp %4 : i32 to f32
      %cst_21 = arith.constant 1.000000e+00 : f32
      %cst_22 = arith.constant 3.200000e+01 : f32
      %54 = arith.maximumf %cst_21, %53 : f32
      %55 = arith.minimumf %cst_22, %54 : f32
      %c0_23 = arith.constant 0 : index
      %c0_24 = arith.constant 0 : index
      %56 = vector.load %arg13[%c0_23, %c0_24] : memref<1x32xf32, #tpu.memory_space<vmem>>, vector<1x32xf32>
      %57 = vector.broadcast %55 : f32 to vector<1x32xf32>
      %58 = arith.divf %56, %57 : vector<1x32xf32>
      %59 = arith.truncf %58 : vector<1x32xf32> to vector<1x32xbf16>
      %c0_25 = arith.constant 0 : index
      %c0_26 = arith.constant 0 : index
      %60 = vector.load %arg8[%c0_25, %c0_26] : memref<32x32xbf16, #tpu.memory_space<vmem>>, vector<32x32xbf16>
      %cst_27 = arith.constant dense<0.000000e+00> : vector<1x32xf32>
      %61 = tpu.matmul %59, %60, %cst_27 {dimension_numbers = #tpu.dot_dimension_numbers<[1], [0], [0], [1], [0, 0, 1, 1], [], []>} : vector<1x32xbf16>, vector<32x32xbf16>, vector<1x32xf32> -> vector<1x32xf32>
      %c0_28 = arith.constant 0 : index
      %c0_29 = arith.constant 0 : index
      %62 = vector.load %arg9[%c0_28, %c0_29] : memref<1x32xf32, #tpu.memory_space<vmem>>, vector<1x32xf32>
      %63 = arith.addf %61, %62 : vector<1x32xf32>
      %64 = math.tanh %63 : vector<1x32xf32>
      %65 = arith.truncf %64 : vector<1x32xf32> to vector<1x32xbf16>
      %c0_30 = arith.constant 0 : index
      %c0_31 = arith.constant 0 : index
      %66 = vector.load %arg10[%c0_30, %c0_31] : memref<32x128xbf16, #tpu.memory_space<vmem>>, vector<32x128xbf16>
      %cst_32 = arith.constant dense<0.000000e+00> : vector<1x128xf32>
      %67 = tpu.matmul %65, %66, %cst_32 {dimension_numbers = #tpu.dot_dimension_numbers<[1], [0], [0], [1], [0, 0, 1, 1], [], []>} : vector<1x32xbf16>, vector<32x128xbf16>, vector<1x128xf32> -> vector<1x128xf32>
      %c0_33 = arith.constant 0 : index
      %c0_34 = arith.constant 0 : index
      %68 = vector.load %arg11[%c0_33, %c0_34] : memref<1x128xf32, #tpu.memory_space<vmem>>, vector<1x128xf32>
      %69 = arith.addf %67, %68 : vector<1x128xf32>
      %c0_35 = arith.constant 0 : index
      %c0_36 = arith.constant 0 : index
      %c0_37 = arith.constant 0 : index
      %70 = vector.load %arg12[%c0_35, %c0_36, %c0_37] : memref<1x1x128xf32, #tpu.memory_space<vmem>>, vector<1x1x128xf32>
      %71 = vector.shape_cast %70 : vector<1x1x128xf32> to vector<1x128xf32>
      %72 = vector.shape_cast %69 : vector<1x128xf32> to vector<1x1x128xf32>
      tpu.vector_store %arg12[%c0_35, %c0_36, %c0_37], %72 {strides = array<i32>} : memref<1x1x128xf32, #tpu.memory_space<vmem>>, vector<1x1x128xf32>,
    } else {
    }
    return
  }
  func.func @transform_0(%arg0: i32, %arg1: i32, %arg2: memref<2xi32, #tpu.memory_space<smem>>) -> (i32, i32, i32) {
    %c0_i32 = arith.constant 0 : i32
    %c0_i32_0 = arith.constant 0 : i32
    return %arg0, %arg1, %c0_i32 : i32, i32, i32
  }
  func.func @transform_1(%arg0: i32, %arg1: i32, %arg2: memref<2xi32, #tpu.memory_space<smem>>) -> (i32, i32, i32) {
    %c0_i32 = arith.constant 0 : i32
    %c0_i32_0 = arith.constant 0 : i32
    return %arg0, %arg1, %c0_i32 : i32, i32, i32
  }
  func.func @transform_2(%arg0: i32, %arg1: i32, %arg2: memref<2xi32, #tpu.memory_space<smem>>) -> (i32, i32) {
    %c0_i32 = arith.constant 0 : i32
    %c0_i32_0 = arith.constant 0 : i32
    %c0_i32_1 = arith.constant 0 : i32
    return %c0_i32, %c0_i32_0 : i32, i32
  }
  func.func @transform_3(%arg0: i32, %arg1: i32, %arg2: memref<2xi32, #tpu.memory_space<smem>>) -> (i32, i32) {
    %c0_i32 = arith.constant 0 : i32
    %c0_i32_0 = arith.constant 0 : i32
    %c0_i32_1 = arith.constant 0 : i32
    return %c0_i32, %c0_i32_0 : i32, i32
  }
  func.func @transform_4(%arg0: i32, %arg1: i32, %arg2: memref<2xi32, #tpu.memory_space<smem>>) -> (i32, i32) {
    %c0_i32 = arith.constant 0 : i32
    %c0_i32_0 = arith.constant 0 : i32
    return %arg1, %c0_i32 : i32, i32
  }
  func.func @transform_5(%arg0: i32, %arg1: i32, %arg2: memref<2xi32, #tpu.memory_space<smem>>) -> (i32, i32) {
    %c0_i32 = arith.constant 0 : i32
    %c0_i32_0 = arith.constant 0 : i32
    %c0_i32_1 = arith.constant 0 : i32
    return %c0_i32, %c0_i32_0 : i32, i32
  }
  func.func @transform_6(%arg0: i32, %arg1: i32, %arg2: memref<2xi32, #tpu.memory_space<smem>>) -> (i32, i32) {
    %c0_i32 = arith.constant 0 : i32
    %c0_i32_0 = arith.constant 0 : i32
    %c0_i32_1 = arith.constant 0 : i32
    return %c0_i32, %c0_i32_0 : i32, i32
  }
  func.func @transform_7(%arg0: i32, %arg1: i32, %arg2: memref<2xi32, #tpu.memory_space<smem>>) -> (i32, i32) {
    %c0_i32 = arith.constant 0 : i32
    %c0_i32_0 = arith.constant 0 : i32
    %c0_i32_1 = arith.constant 0 : i32
    return %c0_i32, %c0_i32_0 : i32, i32
  }
  func.func @transform_8(%arg0: i32, %arg1: i32, %arg2: memref<2xi32, #tpu.memory_space<smem>>) -> (i32, i32) {
    %c0_i32 = arith.constant 0 : i32
    %c0_i32_0 = arith.constant 0 : i32
    %c0_i32_1 = arith.constant 0 : i32
    return %c0_i32, %c0_i32_0 : i32, i32
  }
  func.func @transform_9(%arg0: i32, %arg1: i32, %arg2: memref<2xi32, #tpu.memory_space<smem>>) -> (i32, i32, i32) {
    %c0_i32 = arith.constant 0 : i32
    %c0_i32_0 = arith.constant 0 : i32
    %c0_i32_1 = arith.constant 0 : i32
    return %arg0, %c0_i32, %c0_i32_0 : i32, i32, i32
  }
}

</mosaic_0001>

<bundles_post_ra>
// kernel: tpu_custom_call.1
= control target key start
LH: loop header
LB: loop body
LE: loop exit
PB: predicated region body
PF: predicated region fallthrough
CT: control target
= control target key end

     0   :  { %s1480_s0 = inlined_call_operand.vmem [shape: s32[2], index: 0, kind: input, shape index: {}]   ;;  %s1481_s1 = inlined_call_operand.vmem [shape: s32[2,32,1], index: 1, kind: input, shape index: {}]   ;;  %s1482_s2 = inlined_call_operand.vmem [shape: s32[2,32,1], index: 2, kind: input, shape index: {}]   ;;  %s1483_s3 = inlined_call_operand.vmem [shape: bf16[100,32], index: 3, kind: input, shape index: {}]   ;;  %s1484_s4 = inlined_call_operand.vmem [shape: bf16[2,32], index: 4, kind: input, shape index: {}]   ;;  %s1485_s5 = inlined_call_operand.vmem [shape: bf16[32,32], index: 5, kind: input, shape index: {}]   ;;  %s1486_s6 = inlined_call_operand.vmem [shape: bf16[32,32], index: 6, kind: input, shape index: {}]   ;;  %s1487_s7 = inlined_call_operand.vmem [shape: f32[1,32], index: 7, kind: input, shape index: {}]   ;;  %s1488_s8 = inlined_call_operand.vmem [shape: bf16[32,128], index: 8, kind: input, shape index: {}]   ;;  %s1489_s9 = inlined_call_operand.vmem [shape: f32[1,128], index: 9, kind: input, shape index: {}]   ;;  %s1490_s10 = inlined_call_operand.hbm [shape: f32[2,1,128], index: 10, kind: output, shape index: {}]  }
   0x1   :  { %s15_s15 = sshll.u32 %s1480_s0, 4  ;;  %s16_s15 = int_to_ptr.vmem [resolvable:$true] %s15_s15 }
   0x2   :  { %s1131_s16 = scalar_lea.vmem %s16_s15, 16  ;;  %p1136_p1 = scmp.lt.s32.totalorder %s16_s15, %s16_s15 }
   0x3   :  { %p1132_p0 = scmp.ne.s32.totalorder %s16_s15, %s1131_s16  ;;  %p1137_p2 = scmp.lt.s32.totalorder %s1131_s16, %s1131_s16 }
   0x5   :  { %p1138_p3 = por %p1137_p2, %p1136_p1 }
   0x7   :  { %p1139_p4 = pnand %p1138_p3, %p1132_p0 }
   0x9   :  { %1142 = shalt.err (!%p1139_p4)  }
   0xa   :  { %s1223_s17 = smov [#allocation4]  }
   0xb   :  { %18 = dma.vmem_to_smem %s16_s15, 16, %s1223_s17, [#allocation3] }
   0xc   :  { %1193 = dma.done.wait [#allocation3], 16 }
   0xd   :  { %1194 = vsyncadd [#allocation3], 4294967280 }
   0xe   :  { %20 = sfence }
   0xf   :  { %21 = vsyncpa [#allocation6], 0 }
  0x10   :  { %23 = vsyncpa [#allocation6 + $0x1], 0  ;;  %s1288_s18 = smov 0   ;;  %s1290_s19 = smov 0  }
  0x11   :  { %s1292_s0 = smov 0   ;;  %s1294_s20 = smov 0  }
  0x12   :  { %s1296_s21 = smov 0   ;;  %s1298_s22 = smov 0  }
  0x13 LB: > { %s956_s23 = sadd.s32 4294967295, %s1221_s22   ;;  %s957_s24 = sadd.s32 4294967294, %s1221_s22   ;;  %s1221_s22 = sphi %s1298_s22, %s29_s22   ;;  %s1217_s21 = sphi %s1296_s21, %s1500_s21   ;;  %s1213_s20 = sphi %s1294_s20, %s1499_s20   ;;  %s1209_s0 = sphi %s1292_s0, %s1498_s0   ;;  %s1205_s19 = sphi %s1290_s19, %s1497_s19   ;;  %s1201_s18 = sphi %s1288_s18, %s1496_s18  }
  0x14   : > { %s41_s25 = sadd.s32 1, %s1217_s21  ;;  %s256_s26 = sadd.s32 1, %s1209_s0 }
  0x15   : > { %p43_p5 = scmp.ge.s32.totalorder %s41_s25, 2  ;;  %p266_p6 = scmp.ne.s32.totalorder %s1209_s0, %s1205_s19 }
  0x16   : > { %p267_p7 = scmp.eq.s32.totalorder %s956_s23, 1  ;;  %p272_p8 = scmp.ne.s32.totalorder %s1205_s19, %s1201_s18 }
  0x17   : > { %s1502_s25 = smov (%p43_p5, %s41_s25), 0  ;;  %p273_p10 = scmp.eq.s32.totalorder %s957_s24, 1 }
  0x18   : > { %1492 = sst [smem:[#allocation9_spill]] %s1502_s25  ;;  %p1328_p9 = por %p267_p7, %p266_p6 }
  0x19   : > { %s253_s28 = ssub.s32 %s1217_s21, %s1502_s25  ;;  %p961_p11 = scmp.ge.s32.totalorder %s1221_s22, 1 }
  0x1a   : > { %p254_p12 = scmp.eq.s32.totalorder %s253_s28, 0  ;;  %p1335_p13 = por %p273_p10, %p272_p8 }
  0x1b   : > { %p344_p0 = scmp.lt.s32.totalorder %s1221_s22, 3 }
  0x1c   : > { %s1341_s30 = scalar_select %p254_p12, %s1209_s0, %s256_s26  }
  0x1d   : > { %p345_p1 = pnand %p961_p11, %p344_p0 }
  0x1e   : > { %p398_p2 = scmp.lt.s32.totalorder (!%p345_p1), %s1213_s20, 1  ;;  %s1228_s11 = smov (!%p345_p1), 32.0  }
  0x1f   : > { %348 = sbr.rel (%p345_p1) target bundleno = 833 (0x341), region = 56 }
  0x24   : > { %vm620_vm0 = vcmask 1041408   ;;  %v1224_v0 = vmov 0   ;;  %v1116_v1 = vld [vmem:[%s1483_s3 + $0x30] ss:$0 sps:$4 sm:$0x33]   ;;  %v1117_v2 = vld [vmem:[%s1483_s3 + $0x28] sm:$0xff]   ;;  %v432_v26 = vlaneseq }
  0x25   : > { %1115 = vset.pattern.permute.xlu1 %v1224_v0  ;;  %1114 = vset.pattern.permute.xlu0 %v1224_v0  ;;  %s399_s15 = scalar_select %p398_p2, %s1213_s20, 1  ;;  %v622_v3 = vsel %vm620_vm0, %v1116_v1, 0  ;;  %v1118_v4 = vld [vmem:[%s1483_s3 + $0x20] sm:$0xff]   ;;  %v1225_v5 = vmov 0.0   ;;  %v1119_v14 = vld [vmem:[%s1483_s3 + $0x18] sm:$0xff]   ;;  %v1120_v18 = vld [vmem:[%s1483_s3 + $0x10] sm:$0xff]  }
  0x26   : > { %1052 = vmatprep.subr.msk.bf16.mxu0 %vm620_vm0, %v1116_v1  ;;  %1036 = vmatprep.subr.bf16.mxu1 %v1225_v5  ;;  %v1121_v21 = vld [vmem:[%s1483_s3 + $0x8] sm:$0xff]   ;;  %v1122_v24 = vld [vmem:[%s1483_s3] sm:$0xff]   ;;  %v460_v27 = vand.u32 127, %v432_v26  ;;  %vm613_vm5 = vcmask 818176   ;;  %vm428_vm6 = vcmask 253952   ;;  %vm1226_vm7 = vmmov 0  }
  0x27   : > { %s992_s16 = sshll.u32 %s399_s15, 5  ;;  %1019 = vmatpush3.bf16.msra.mxu0 %v622_v3  ;;  %429 = vst.msk [vmem:[#allocation2] sm:$0x1] %vm428_vm6, %v1225_v5  ;;  %v1123_v38 = vld [vmem:[%s1486_s6 + $0x8] sm:$0xff]   ;;  %1040 = vmatprep.mubr.msk.bf16.mxu1 %vm1226_vm7, %v1225_v5  ;;  %v1124_v39 = vld [vmem:[%s1486_s6] sm:$0xff]   ;;  %v433_v44 = vshrl.u32 %v432_v26, 7 }
  0x28   : > { %s405_s24 = scalar_lea.vmem %s1481_s1, %s992_s16  ;;  %s415_s25 = scalar_lea.vmem %s1482_s2, %s992_s16  ;;  %1020 = vmatprep.subr.bf16.mxu0 %v1117_v2  ;;  %1037 = vmatpush3.bf16.msra.mxu1 %v1123_v38  ;;  %v508_v45 = vld [vmem:[%s1484_s4] sm:$0x1]  ;;  %v1002_v62 = vld [vmem:[%s1485_s5 + $0x8] sm:$0xff]   ;;  %vm690_vm12 = vcmask 261120  }
  0x29   : > { %v457_v6 = vld [vmem:[%s405_s24 + $0x10] sm:$0xff]  ;;  %v455_v7 = vld [vmem:[%s405_s24] sm:$0xff]  ;;  %v501_v8 = vld [vmem:[%s415_s25 + $0x8] sm:$0xff]  ;;  %1038 = vmatprep.subr.bf16.mxu1 %v1225_v5  ;;  %v544_v46 = vsub.s32 1, %v433_v44  ;;  %v509_v49 = vunpack.c.l.bf16 %v508_v45  ;;  %v516_v50 = vsub.s32 0, %v433_v44  ;;  %s1393_s15 = sld [smem:[#allocation4 + %s1213_s20]] }
  0x2a   : > { %468 = vperm.xlu1 %1115, %v457_v6   ;;  %462 = vperm.xlu0 %1114, %v455_v7   ;;  %v500_v9 = vld [vmem:[%s415_s25] sm:$0xff]  ;;  %v458_v10 = vld [vmem:[%s405_s24 + $0x18] sm:$0xff]  ;;  %v456_v11 = vld [vmem:[%s405_s24 + $0x8] sm:$0xff]  ;;  %v505_v12 = vcvt.s32.f32 %v501_v8  ;;  %v435_v0 = vadd.s32 16, %v433_v44  ;;  %v434_v7 = vadd.s32 8, %v433_v44  ;;  %s395_s24 = sand.u32 1, %s1205_s19  }
  0x2b   : > { %v504_v13 = vcvt.s32.f32 %v500_v9  ;;  %1021 = vmatpush3.bf16.msra.mxu0 %v1117_v2  ;;  %v502_v17 = vld [vmem:[%s415_s25 + $0x10] sm:$0xff]  ;;  %v503_v20 = vld [vmem:[%s415_s25 + $0x18] sm:$0xff]  ;;  %v545_v51 = vrot.slane %v509_v49, %v544_v46  ;;  %v517_v52 = vrot.slane %v509_v49, %v516_v50  ;;  %v995_v60 = vld [vmem:[%s1485_s5] sm:$0xff]   ;;  %v1000_v9 = vunpack.c.l.bf16 %v1002_v62  ;;  %s1227_s25 = smov 1.0   ;;  %s842_s16 = scalar_lea.sflag [#allocation6], %s395_s24 }
  0x2c   : > { %1022 = vmatprep.subr.bf16.mxu0 %v1118_v4  ;;  %v511_v15 = vsub.f32 1.0, %v505_v12  ;;  %v506_v19 = vcvt.s32.f32 %v502_v17  ;;  %v507_v23 = vcvt.s32.f32 %v503_v20  ;;  %1039 = vmatpush3.bf16.msra.mxu1 %v1124_v39  ;;  %v996_v6 = vunpack.c.l.bf16 %v995_v60 }
  0x2d   : > { %v510_v16 = vsub.f32 1.0, %v504_v13  ;;  %1044 = vmatprep.subr.bf16.mxu1 %v1225_v5  ;;  %v997_v20 = vunpack.c.h.bf16 %v995_v60 }
  0x2e   : > { %471 = vperm.xlu1 %1115, %v458_v10   ;;  %465 = vperm.xlu0 %1114, %v456_v11   ;;  %v512_v22 = vsub.f32 1.0, %v506_v19  ;;  %v513_v25 = vsub.f32 1.0, %v507_v23 }
  0x2f   : > { %1023 = vmatpush3.bf16.msra.mxu0 %v1118_v4  ;;  %v442_v1 = vstv %s1393_s15  ;;  %s710_s26 = scvt.s32.f32 %s1393_s15 }
  0x30   : > { %1024 = vmatprep.subr.bf16.mxu0 %v1119_v14  ;;  %vm443_vm8 = vcmp.lt.s32.totalorder %v433_v44, %v442_v1  ;;  %vm445_vm9 = vcmp.lt.s32.totalorder %v435_v0, %v442_v1  ;;  %vm444_vm10 = vcmp.lt.s32.totalorder %v434_v7, %v442_v1 }
  0x31   : > { %v967_v26 = vsel %vm444_vm10, 1.0, %v1225_v5  ;;  %s711_s28 = smax.f32 %s1227_s25, %s710_s26 }
  0x32   : > { %525 = vperm.xlu1 %1115, %v511_v15   ;;  %520 = vperm.xlu0 %1114, %v510_v16   ;;  %v1001_v16 = vunpack.c.h.bf16 %v1002_v62  ;;  %s712_s12 = smin.f32 %s1228_s11, %s711_s28  ;;  %s989_s28 = sshll.u32 %s1213_s20, 4 }
  0x33   : > { %1025 = vmatpush3.bf16.msra.mxu0 %v1119_v14  ;;  %v436_v14 = vadd.s32 24, %v433_v44  ;;  %s396_s11 = scalar_lea.vmem [#allocation5], %s395_s24  ;;  %s1434_s15 = scalar_lea.hbm %s1490_s10, %s989_s28 }
  0x34   : > { %1026 = vmatprep.subr.bf16.mxu0 %v1120_v18  ;;  %s1229_s20 = smov [#allocation5]  }
  0x35   : > { %vm446_vm11 = vcmp.lt.s32.totalorder %v436_v14, %v442_v1  ;;  %s1147_s23 = sshll.u32 %s1229_s20, 4  ;;  %s1148_s23 = int_to_ptr.vmem [resolvable:$false] %s1147_s23 }
  0x36   : > { %553 = vperm.xlu1 %1115, %v505_v12   ;;  %548 = vperm.xlu0 %1114, %v504_v13   ;;  %s1149_s26 = scalar_lea.vmem %s1148_s23, 32 }
  0x37   : > { %1027 = vmatpush3.bf16.msra.mxu0 %v1120_v18 }
  0x38   : > { %1028 = vmatprep.subr.bf16.mxu0 %v1121_v21 }
  0x3a   : > { %558 = vperm.xlu1 %1115, %v506_v19   ;;  %530 = vperm.xlu0 %1114, %v512_v22  }
  0x3b   : > { %1029 = vmatpush3.bf16.msra.mxu0 %v1121_v21  ;;  %v966_v21 = vsel %vm443_vm8, 1.0, %v1225_v5 }
  0x3c   : > { %1030 = vmatprep.subr.bf16.mxu0 %v1122_v24 }
  0x3e   : > { %563 = vperm.xlu1 %1115, %v507_v23   ;;  %535 = vperm.xlu0 %1114, %v513_v25   ;;  %v968_v25 = vsel %vm445_vm9, 1.0, %v1225_v5 }
  0x3f   : > { %1031 = vmatpush3.bf16.msra.mxu0 %v1122_v24 }
  0xa5   : > { %v469_v28 = vpop.permute.xlu1 %468  ;;  %v463_v29 = vpop.permute.xlu0 %462 }
  0xa6   : > { %vm475_vm1 = vcmp.eq.s32.totalorder %v469_v28, %v460_v27  ;;  %vm473_vm2 = vcmp.eq.s32.totalorder %v463_v29, %v460_v27 }
  0xa7   : > { %v972_v32 = vsel %vm475_vm1, 1.0, %v1225_v5  ;;  %v970_v33 = vsel %vm473_vm2, 1.0, %v1225_v5 }
  0xa9   : > { %v472_v30 = vpop.permute.xlu1 %471  ;;  %v466_v31 = vpop.permute.xlu0 %465 }
  0xaa   : > { %vm476_vm3 = vcmp.eq.s32.totalorder %v472_v30, %v460_v27  ;;  %vm474_vm4 = vcmp.eq.s32.totalorder %v466_v31, %v460_v27  ;;  %v969_v30 = vsel %vm446_vm11, 1.0, %v1225_v5 }
  0xab   : > { %v973_v34 = vsel %vm476_vm3, 1.0, %v1225_v5  ;;  %v971_v35 = vsel %vm474_vm4, 1.0, %v1225_v5 }
  0xac   : > { %v486_v36 = vpack.c.bf16 %v973_v34, %v972_v32  ;;  %v485_v37 = vpack.c.bf16 %v971_v35, %v970_v33 }
  0xad   : > { %v526_v40 = vpop.permute.xlu1 %525  ;;  %v521_v41 = vpop.permute.xlu0 %520 }
  0xae   : > { %1032 = vmatprep.mubr.msk.bf16.mxu0 %vm613_vm5, %v485_v37  ;;  %v538_v61 = vmul.f32 %v521_v41, %v517_v52  ;;  %v539_v8 = vmul.f32 %v526_v40, %v517_v52 }
  0xaf   : > { %1033 = vmatmul.mubr.msk.bf16.vlgmr.msra.gmra.mxu0 %vm613_vm5, %v486_v36 }
  0xb1   : > { %v554_v42 = vpop.permute.xlu1 %553  ;;  %v549_v43 = vpop.permute.xlu0 %548 }
  0xb2   : > { %v566_v55 = vmul.f32 %v549_v43, %v545_v51  ;;  %v567_v63 = vmul.f32 %v554_v42, %v545_v51  ;;  %v714_v43 = vstv %s712_s12  ;;  %s854_s12 = sshll.u32 %s396_s11, 4  ;;  %s1436_s12 = int_to_ptr.vmem [resolvable:$true] %s854_s12 }
  0xb3   : > { %1127 = vrcp.f32 %v714_v43  ;;  %s1143_s17 = scalar_lea.vmem %s1436_s12, 16  ;;  %p1150_p6 = scmp.lt.s32.totalorder %s1436_s12, %s1148_s23 }
  0xb4   : > { %v570_v4 = vadd.f32 %v566_v55, %v538_v61  ;;  %v571_v17 = vadd.f32 %v567_v63, %v539_v8  ;;  %v1126_v55 = vld [vmem:[%s1488_s8] sm:$0xff]   ;;  %p1144_p3 = scmp.ne.s32.totalorder %s1436_s12, %s1143_s17  ;;  %p1151_p7 = scmp.lt.s32.totalorder %s1149_s26, %s1143_s17 }
  0xb5   : > { %v559_v47 = vpop.permute.xlu1 %558  ;;  %v531_v48 = vpop.permute.xlu0 %530 }
  0xb6   : > { %v568_v56 = vmul.f32 %v559_v47, %v545_v51  ;;  %v540_v57 = vmul.f32 %v531_v48, %v517_v52  ;;  %v685_v47 = vld [vmem:[#allocation2] sm:$0x1]  ;;  %p1145_p4 = pnand %p1144_p3, %p1328_p9  ;;  %p1152_p8 = por %p1151_p7, %p1150_p6 }
  0xb8   : > { %v572_v3 = vadd.f32 %v568_v56, %v540_v57  ;;  %v722_v56 = vld [vmem:[%s1487_s7] sm:$0x1]  ;;  %p1146_p5 = pneg %p1145_p4 }
  0xb9   : > { %v564_v53 = vpop.permute.xlu1 %563  ;;  %v536_v54 = vpop.permute.xlu0 %535 }
  0xba   : > { %v569_v58 = vmul.f32 %v564_v53, %v545_v51  ;;  %v541_v59 = vmul.f32 %v536_v54, %v517_v52  ;;  %v1125_v54 = vld [vmem:[%s1488_s8 + $0x8] sm:$0xff]   ;;  %p1153_p10 = pnand %p1152_p8, %p1146_p5 }
  0xbc   : > { %v573_v11 = vadd.f32 %v569_v58, %v541_v59 }
  0xc0   : > { %v1128_v50 = vpop.eup %1127 }
 0x16f   : > { %v1034_v2 = vpop.f32.mrf.mxu0 }
 0x170   : > { %v667_v12 = vadd.f32 %v1034_v2, %v572_v3 }
 0x171   : > { %v658_v10 = vpop.f32.mrf.mxu0 }
 0x172   : > { %v659_v13 = vadd.f32 %v658_v10, %v570_v4  ;;  %v683_v23 = vadd.f32 %v1000_v9, %v667_v12 }
 0x173   : > { %v1035_v15 = vpop.f32.mrf.mxu0 }
 0x174   : > { %v681_v18 = vadd.f32 %v996_v6, %v659_v13  ;;  %v670_v19 = vadd.f32 %v1035_v15, %v573_v11  ;;  %v688_v31 = vmul.f32 %v968_v25, %v683_v23 }
 0x175   : > { %v661_v22 = vpop.f32.mrf.mxu0 }
 0x176   : > { %v662_v24 = vadd.f32 %v661_v22, %v571_v17  ;;  %v686_v27 = vmul.f32 %v966_v21, %v681_v18  ;;  %v684_v28 = vadd.f32 %v1001_v16, %v670_v19  ;;  %v694_v37 = vsel %vm690_vm12, %v688_v31, 0.0 }
 0x178   : > { %v682_v29 = vadd.f32 %v997_v20, %v662_v24  ;;  %v691_v33 = vsel %vm690_vm12, %v686_v27, 0.0  ;;  %v689_v34 = vmul.f32 %v969_v30, %v684_v28 }
 0x17a   : > { %v687_v32 = vmul.f32 %v967_v26, %v682_v29  ;;  %v696_v39 = vsel %vm690_vm12, %v689_v34, 0.0 }
 0x17c   : > { %v692_v35 = vsel %vm690_vm12, %v687_v32, 0.0 }
 0x17d   : > { %v693_v36 = vadd.f32 %v692_v35, %v691_v33 }
 0x17f   : > { %v695_v38 = vadd.f32 %v694_v37, %v693_v36 }
 0x181   : > { %v697_v40 = vadd.f32 %v696_v39, %v695_v38 }
 0x183   : > { %v698_v41 = vrot.slane %v697_v40, 4 }
 0x185   : > { %v699_v42 = vadd.f32 %v698_v41, %v697_v40 }
 0x187   : > { %v700_v44 = vrot.slane %v699_v42, 2 }
 0x189   : > { %v701_v45 = vadd.f32 %v700_v44, %v699_v42 }
 0x18b   : > { %v702_v46 = vrot.slane %v701_v45, 1 }
 0x18d   : > { %v703_v48 = vadd.f32 %v702_v46, %v701_v45 }
 0x18f   : > { %v704_v49 = vadd.f32 %v703_v48, %v685_v47 }
 0x191   : > { %706 = vst.msk [vmem:[#allocation2] sm:$0x1] %vm428_vm6, %v704_v49 }
 0x198   : > { %v713_v51 = vld [vmem:[#allocation2] sm:$0x1] }
 0x199   : > { %v716_v52 = vmul.f32 %v1128_v50, %v713_v51 }
 0x19b   : > { %v717_v53 = vpack.c.bf16 %v716_v52, %v716_v52 }
 0x19d   : > { %1041 = vmatmul.mubr.msk.bf16.vlgmr.msra.gmra.mxu1 %vm690_vm12, %v717_v53 }
 0x19e   : > { %1048 = vmatprep.mubr.msk.bf16.mxu1 %vm1226_vm7, %v1225_v5  ;;  %1045 = vmatpush3.bf16.msra.mxu1 %v1125_v54 }
 0x19f   : > { %1046 = vmatprep.subr.bf16.mxu1 %v1225_v5  ;;  %v784_v5 = vld [vmem:[%s1489_s9] sm:$0x1] }
 0x1a2   : > { %1047 = vmatpush3.bf16.msra.mxu1 %v1126_v55 }
 0x25d   : > { %v772_v57 = vpop.f32.mrf.mxu1 }
 0x25e   : > { %v773_v58 = vadd.f32 %v772_v57, %v722_v56 }
 0x25f   : > { %v1042_v59 = vpop.f32.mrf.mxu1 }
 0x260   : > { %1129 = vtanh.f32 %v773_v58 }
 0x261   : > { %v775_v60 = vpop.f32.mrf.mxu1 }
 0x263   : > { %v1043_v61 = vpop.f32.mrf.mxu1 }
 0x26d   : > { %v1130_v62 = vpop.eup %1129 }
 0x26e   : > { %v779_v63 = vpack.c.bf16 %v1130_v62, %v1130_v62 }
 0x270   : > { %1049 = vmatmul.mubr.msk.bf16.vlgmr.msra.gmra.mxu1 %vm690_vm12, %v779_v63 }
 0x330   : > { %v834_v0 = vpop.f32.mrf.mxu1 }
 0x331   : > { %v835_v1 = vadd.f32 %v834_v0, %v784_v5 }
 0x332   : > { %v1050_v2 = vpop.f32.mrf.mxu1 }
 0x333   : > { %840 = vst [vmem:[%s396_s11] sm:$0x1] %v835_v1 }
 0x334   : > { %v837_v3 = vpop.f32.mrf.mxu1 }
 0x335   : > { %1156 = shalt.err (!%p1153_p10)
}
 0x336   : > { %s1157_s25 = scalar_lea.hbm %s1434_s15, 16  ;;  %s1161_s11 = scalar_lea.hbm %s1490_s10, 32 }
 0x337   : > { %p1158_p11 = scmp.ne.s32.totalorder %s1434_s15, %s1157_s25  ;;  %p1162_p1 = scmp.lt.s32.totalorder %s1434_s15, %s1490_s10 }
 0x338   : > { %p1163_p2 = scmp.lt.s32.totalorder %s1161_s11, %s1157_s25 }
 0x339   : > { %p1159_p12 = pnand %p1158_p11, %p1328_p9 }
 0x33a   : > { %p1164_p3 = por %p1163_p2, %p1162_p1 }
 0x33b   : > { %p1160_p0 = pneg %p1159_p12 }
 0x33d   : > { %p1165_p4 = pnand %p1164_p3, %p1160_p0 }
 0x33f   : > { %1168 = shalt.err (!%p1165_p4)
}
 0x340   : > { %1053 = dma.vmem_to_hbm [thread:$0]  (%p1328_p9), %s1436_s12, 16, %s1434_s15, %s842_s16   ;;  %v1051_v4 = vpop.f32.mrf.mxu1 }
 0x341 PF: > { %p1059_p5 = scmp.ge.s32.totalorder %s1221_s22, 2  ;;  %s866_s17 = sand.u32 1, %s1201_s18  }
 0x342   : > { %s867_s20 = scalar_lea.sflag [#allocation6], %s866_s17 }
 0x343   : > { %p1056_p6 = pnand %p1059_p5, %p1335_p13 }
 0x345   : > { %p1057_p7 = pneg %p1056_p6 }
 0x347   : > { %1196 = dma.done.wait (%p1057_p7), %s867_s20, 16  }
 0x348   : > { %1198 = vsyncadd (%p1057_p7), %s867_s20, 4294967280  ;;  %s29_s22 = sadd.s32 1, %s1221_s22   ;;  %s1495_s27 = sld [smem:[#allocation9_spill]] }
 0x349   : > { %p26_p8 = scmp.ge.s32.totalorder %s29_s22, 4   ;;  %s1496_s18 = smov %s1205_s19 }
 0x34a   : > { %s1497_s19 = smov %s1209_s0  ;;  %s1498_s0 = smov %s1341_s30 }
 0x34b   : > { %s1499_s20 = smov %s1217_s21  ;;  %28 = sbr.rel (!%p26_p8) target bundleno = 19 (0x13), region = 105 }
 0x34e   : > { %s1500_s21 = smov %s1495_s27 }
 0x350   :  { %871 = vsyncpa [#allocation6], 1 }
 0x351   :  { %873 = vsyncpa [#allocation6 + $0x1], 1 }

</bundles_post_ra>
